<compile_context>
chip_gen: v5e
topology: v5e:2x2
jax: 0.10.0
libtpu: 0.0.40
codegen_flags: <defaults>
</compile_context>

<pallas_src>
from functools import partial

import jax
import jax.numpy as jnp
from jax import lax
from jax.experimental import pallas as pl
from jax.experimental.pallas import tpu as pltpu


_VMEM_LIMIT = 48 * 1024 * 1024  # headroom below v7x's 64 MiB physical VMEM


def _cparams(*sem):
    return pltpu.CompilerParams(dimension_semantics=sem,
                                vmem_limit_bytes=_VMEM_LIMIT)


def _pick_tile(dim, pref):
    """Largest tile <= pref that is a multiple of 128 and divides dim; else full dim."""
    if dim <= pref or dim % 128 != 0:
        return dim
    for t in range(pref, 0, -128):
        if dim % t == 0:
            return t
    return dim


# ----------------------------------------------------------------------------
# Kernel 1: gram matrix  G = (F @ F.T) / (a*b*c*d), tiled over the contraction.
# ----------------------------------------------------------------------------
def _gram_kernel(f_ref, o_ref, acc_ref, *, inv_scale):
    kk = pl.program_id(0)

    @pl.when(kk == 0)
    def _():
        acc_ref[...] = jnp.zeros_like(acc_ref)

    f = f_ref[...]  # (m, tk), native dtype straight into the MXU
    acc_ref[...] += lax.dot_general(
        f, f, (((1,), (1,)), ((), ())), preferred_element_type=jnp.float32)

    @pl.when(kk == pl.num_programs(0) - 1)
    def _():
        o_ref[...] = acc_ref[...] * inv_scale


def gram_matrix(x, *, tile_k=512):
    """x: (a, b, c, d) NCHW feature map -> (a*b, a*b) gram matrix (f32)."""
    a, b, c, d = x.shape
    m, k = a * b, c * d
    tk = _pick_tile(k, tile_k)
    feats = x.reshape(m, k)
    return pl.pallas_call(
        partial(_gram_kernel, inv_scale=1.0 / float(a * b * c * d)),
        out_shape=jax.ShapeDtypeStruct((m, m), jnp.float32),
        grid=(k // tk,),
        in_specs=[pl.BlockSpec((m, tk), lambda kk: (0, kk))],
        out_specs=pl.BlockSpec((m, m), lambda kk: (0, 0)),
        scratch_shapes=[pltpu.VMEM((m, m), jnp.float32)],
        compiler_params=_cparams("arbitrary"),
    )(feats)


# ----------------------------------------------------------------------------
# Kernel 2: fused gram-style L1:  mean(|gram(fake) - gram(real)|)
# (both grams accumulated in VMEM, never written to HBM)
# ----------------------------------------------------------------------------
def _gram_l1_kernel(fr_ref, ff_ref, o_ref, gr_ref, gf_ref, *, inv_scale, inv_mm):
    kk = pl.program_id(0)

    @pl.when(kk == 0)
    def _():
        gr_ref[...] = jnp.zeros_like(gr_ref)
        gf_ref[...] = jnp.zeros_like(gf_ref)

    fr = fr_ref[...]
    ff = ff_ref[...]
    dn = (((1,), (1,)), ((), ()))
    gr_ref[...] += lax.dot_general(fr, fr, dn, preferred_element_type=jnp.float32)
    gf_ref[...] += lax.dot_general(ff, ff, dn, preferred_element_type=jnp.float32)

    @pl.when(kk == pl.num_programs(0) - 1)
    def _():
        diff = jnp.abs(gf_ref[...] - gr_ref[...])
        o_ref[0, 0] = jnp.sum(diff) * (inv_scale * inv_mm)


def gram_style_l1(feat_real, feat_fake, *, tile_k=512):
    assert feat_real.shape == feat_fake.shape
    a, b, c, d = feat_real.shape
    m, k = a * b, c * d
    tk = _pick_tile(k, tile_k)
    out = pl.pallas_call(
        partial(_gram_l1_kernel,
                inv_scale=1.0 / float(a * b * c * d),
                inv_mm=1.0 / float(m * m)),
        out_shape=jax.ShapeDtypeStruct((1, 1), jnp.float32),
        grid=(k // tk,),
        in_specs=[pl.BlockSpec((m, tk), lambda kk: (0, kk)),
                  pl.BlockSpec((m, tk), lambda kk: (0, kk))],
        out_specs=pl.BlockSpec((1, 1), lambda kk: (0, 0)),
        scratch_shapes=[pltpu.VMEM((m, m), jnp.float32),
                        pltpu.VMEM((m, m), jnp.float32)],
        compiler_params=_cparams("arbitrary"),
    )(feat_real.reshape(m, k), feat_fake.reshape(m, k))
    return out[0, 0]


# ----------------------------------------------------------------------------
# Kernel 3: warp based on correlation (torch.bmm), tiled over (b, out-HW, HW).
# ----------------------------------------------------------------------------
def _bmm_warp_kernel(x_ref, corr_ref, o_ref, acc_ref):
    kk = pl.program_id(2)

    @pl.when(kk == 0)
    def _():
        acc_ref[...] = jnp.zeros_like(acc_ref)

    acc_ref[...] += jnp.dot(x_ref[...], corr_ref[...],
                            preferred_element_type=jnp.float32)

    @pl.when(kk == pl.num_programs(2) - 1)
    def _():
        o_ref[...] = acc_ref[...].astype(o_ref.dtype)


def warp_basedon_corr(x, corr, *, tile_n=512, tile_k=512):
    """x: (n, c, h, w), corr: (n, h*w, h*w) -> (n, c, h, w)."""
    n, c, h, w = x.shape
    hw = h * w
    tn = _pick_tile(hw, tile_n)
    tk = _pick_tile(hw, tile_k)
    out = pl.pallas_call(
        _bmm_warp_kernel,
        out_shape=jax.ShapeDtypeStruct((n, c, hw), x.dtype),
        grid=(n, hw // tn, hw // tk),
        in_specs=[
            pl.BlockSpec((None, c, tk), lambda b, j, kk: (b, 0, kk)),
            pl.BlockSpec((None, tk, tn), lambda b, j, kk: (b, kk, j)),
        ],
        out_specs=pl.BlockSpec((None, c, tn), lambda b, j, kk: (b, 0, j)),
        scratch_shapes=[pltpu.VMEM((c, tn), jnp.float32)],
        compiler_params=_cparams("parallel", "parallel", "arbitrary"),
    )(x.reshape(n, c, hw), corr)
    return out.reshape(n, c, h, w)


# ----------------------------------------------------------------------------
# Kernel 4: fused warp + L1:  mean(|bmm(x, corr) - target|)
# (warped tensor stays in VMEM; only the scalar loss leaves the kernel)
# ----------------------------------------------------------------------------
def _warp_l1_kernel(x_ref, corr_ref, t_ref, o_ref, acc_ref, sum_ref, *, inv_count):
    b = pl.program_id(0)
    j = pl.program_id(1)
    kk = pl.program_id(2)

    @pl.when((b == 0) & (j == 0) & (kk == 0))
    def _():
        sum_ref[...] = jnp.zeros_like(sum_ref)

    @pl.when(kk == 0)
    def _():
        acc_ref[...] = jnp.zeros_like(acc_ref)

    acc_ref[...] += jnp.dot(x_ref[...], corr_ref[...],
                            preferred_element_type=jnp.float32)

    @pl.when(kk == pl.num_programs(2) - 1)
    def _():
        d = jnp.abs(acc_ref[...] - t_ref[...].astype(jnp.float32))
        sum_ref[...] = sum_ref[...] + jnp.sum(d)

    is_last = ((b == pl.num_programs(0) - 1)
               & (j == pl.num_programs(1) - 1)
               & (kk == pl.num_programs(2) - 1))

    @pl.when(is_last)
    def _():
        o_ref[...] = sum_ref[...] * inv_count


def warp_l1_mean(x, corr, target, *, tile_n=512, tile_k=512):
    """mean(|bmm(x.view(n,c,hw), corr).view_as(target) - target|) as one kernel."""
    n, c, h, w = x.shape
    assert target.shape == x.shape
    hw = h * w
    tn = _pick_tile(hw, tile_n)
    tk = _pick_tile(hw, tile_k)
    out = pl.pallas_call(
        partial(_warp_l1_kernel, inv_count=1.0 / float(n * c * hw)),
        out_shape=jax.ShapeDtypeStruct((1, 1), jnp.float32),
        grid=(n, hw // tn, hw // tk),
        in_specs=[
            pl.BlockSpec((None, c, tk), lambda b, j, kk: (b, 0, kk)),
            pl.BlockSpec((None, tk, tn), lambda b, j, kk: (b, kk, j)),
            pl.BlockSpec((None, c, tn), lambda b, j, kk: (b, 0, j)),
        ],
        out_specs=pl.BlockSpec((1, 1), lambda b, j, kk: (0, 0)),
        scratch_shapes=[pltpu.VMEM((c, tn), jnp.float32),
                        pltpu.VMEM((1, 1), jnp.float32)],
        # global scalar reduction across all grid cells -> keep axes arbitrary
        compiler_params=_cparams("arbitrary", "arbitrary", "arbitrary"),
    )(x.reshape(n, c, hw), corr, target.reshape(n, c, hw))
    return out[0, 0]


# ----------------------------------------------------------------------------
# Kernel 5: standalone L1 loss (mean abs error), tiled with running-sum scratch.
# ----------------------------------------------------------------------------
def _l1_sum_kernel(a_ref, b_ref, o_ref, acc_ref, *, inv_count):
    i = pl.program_id(0)

    @pl.when(i == 0)
    def _():
        acc_ref[...] = jnp.zeros_like(acc_ref)

    d = jnp.abs(a_ref[...].astype(jnp.float32) - b_ref[...].astype(jnp.float32))
    acc_ref[...] = acc_ref[...] + jnp.sum(d)

    @pl.when(i == pl.num_programs(0) - 1)
    def _():
        o_ref[...] = acc_ref[...] * inv_count


def l1_loss(a, b, *, block_rows=512):
    assert a.shape == b.shape
    total = int(a.size)
    lane = 128
    rows = pl.cdiv(total, lane)
    br = min(block_rows, rows)
    br = ((br + 7) // 8) * 8                       # sublane-aligned block rows
    n_blocks = pl.cdiv(rows, br)
    padded_rows = n_blocks * br
    padded = padded_rows * lane

    af = a.reshape(-1)
    bf = b.reshape(-1)
    if padded != total:                            # zero-pad: |0-0| adds nothing
        af = jnp.pad(af, (0, padded - total))
        bf = jnp.pad(bf, (0, padded - total))
    af = af.reshape(padded_rows, lane)
    bf = bf.reshape(padded_rows, lane)

    out = pl.pallas_call(
        partial(_l1_sum_kernel, inv_count=1.0 / float(total)),
        out_shape=jax.ShapeDtypeStruct((1, 1), jnp.float32),
        grid=(n_blocks,),
        in_specs=[pl.BlockSpec((br, lane), lambda i: (i, 0)),
                  pl.BlockSpec((br, lane), lambda i: (i, 0))],
        out_specs=pl.BlockSpec((1, 1), lambda i: (0, 0)),
        scratch_shapes=[pltpu.VMEM((1, 1), jnp.float32)],
        compiler_params=_cparams("arbitrary"),
    )(af, bf)
    return out[0, 0]


# ----------------------------------------------------------------------------
# CSDMT wrapper: the module-owned compute paths expressed with the kernels.
# ----------------------------------------------------------------------------
class CSDMTPallas:
    # TODO(synk): networks.Generator / networks.Dis / pretrained VGG19,
    # GANLoss / GPLoss and the optimizers are external modules not provided
    # with CSDMT; their forward passes cannot be reproduced here.  Everything
    # CSDMT itself computes (gram_matrix, warp_basedon_corr and the L1
    # combinations behind loss_G_sem / gram-style losses) is Pallas.
    def __init__(self, weight_semantic=1.0, weight_corr=1.0,
                 weight_contrastive=1.0):
        self.weight_semantic = weight_semantic
        self.weight_corr = weight_corr
        self.weight_contrastive = weight_contrastive

    def warp_basedon_corr(self, x, corr):
        return warp_basedon_corr(x, corr)

    def gram_style_l1(self, feat_ref, feat_fake):
        """L1 between gram matrices of two feature maps (one VGG layer), fused."""
        return gram_style_l1(feat_ref, feat_fake)

    def gram_style(self, ref_feats, fake_feats):
        """Sum of per-layer gram L1 losses (layers supplied externally)."""
        total = jnp.float32(0.0)
        for fr, ff in zip(ref_feats, fake_feats):
            total = total + gram_style_l1(fr, ff)
        return total

    def semantic_loss(self, makeup_parse_down4, corr_ref2source,
                      non_makeup_parse_down4):
        """criterionL1(warp(makeup_parse_down4, corr), non_makeup_parse_down4),
        fused into a single warp+L1 kernel."""
        return warp_l1_mean(makeup_parse_down4, corr_ref2source,
                            non_makeup_parse_down4) * self.weight_semantic


# ----------------------------------------------------------------------------
# pure-JAX references for correctness checking
# ----------------------------------------------------------------------------
def gram_matrix_ref(x):
    a, b, c, d = x.shape
    f = x.reshape(a * b, c * d).astype(jnp.float32)
    return (f @ f.T) / float(a * b * c * d)


def warp_ref(x, corr):
    n, c, h, w = x.shape
    y = jnp.einsum("ncp,npq->ncq",
                   x.reshape(n, c, h * w).astype(jnp.float32),
                   corr.astype(jnp.float32))
    return y.reshape(n, c, h, w).astype(x.dtype)


if __name__ == "__main__":
    key = jax.random.PRNGKey(0)
    k1, k2, k3, k4, k5, k6, k7, k8 = jax.random.split(key, 8)

    # "VGG-like" feature maps for the gram/style path: N=2, C=4, H=W=32
    # (K = H*W = 1024 -> exercises the tiled contraction, grid of 2 K-steps).
    N, C_feat, Hf, Wf = 2, 4, 32, 32
    feat_real = jax.random.normal(k1, (N, C_feat, Hf, Wf), dtype=jnp.float32)
    feat_fake = jax.random.normal(k2, (N, C_feat, Hf, Wf), dtype=jnp.float32)

    # parse maps down-sampled by 4: parse_dim=4, 4x4 spatial.
    parse_dim, h4, w4 = 4, 4, 4
    HW4 = h4 * w4
    makeup_parse_down4 = jax.random.uniform(k3, (N, parse_dim, h4, w4), dtype=jnp.float32)
    non_makeup_parse_down4 = jax.random.uniform(k4, (N, parse_dim, h4, w4), dtype=jnp.float32)
    corr_ref2source = jax.nn.softmax(
        jax.random.normal(k5, (N, HW4, HW4), dtype=jnp.float32), axis=-1)

    model = CSDMTPallas()

    # --- Pallas kernels ---
    warped = model.warp_basedon_corr(makeup_parse_down4, corr_ref2source)
    loss_sem = model.semantic_loss(makeup_parse_down4, corr_ref2source,
                                   non_makeup_parse_down4)
    g_fake = gram_matrix(feat_fake)
    g_real = gram_matrix(feat_real)
    loss_style = model.gram_style_l1(feat_real, feat_fake)
    loss_l1 = l1_loss(feat_fake, feat_real, block_rows=8)  # multi-block reduce

    # multi-tile warp path: hw=256 with 128-wide tiles -> grid (1, 2, 2)
    x_big = jax.random.normal(k6, (1, 8, 16, 16), dtype=jnp.float32)
    corr_big = jax.nn.softmax(
        jax.random.normal(k7, (1, 256, 256), dtype=jnp.float32), axis=-1)
    tgt_big = jax.random.normal(k8, (1, 8, 16, 16), dtype=jnp.float32)
    warped_big = warp_basedon_corr(x_big, corr_big, tile_n=128, tile_k=128)
    loss_warp_big = warp_l1_mean(x_big, corr_big, tgt_big, tile_n=128, tile_k=128)

    jax.block_until_ready((warped, loss_sem, g_fake, g_real, loss_style,
                           loss_l1, warped_big, loss_warp_big))

    # --- correctness vs pure-JAX references ---
    warped_r = warp_ref(makeup_parse_down4, corr_ref2source)
    loss_sem_r = jnp.mean(jnp.abs(warped_r - non_makeup_parse_down4))
    g_fake_r = gram_matrix_ref(feat_fake)
    g_real_r = gram_matrix_ref(feat_real)
    loss_style_r = jnp.mean(jnp.abs(g_fake_r - g_real_r))
    loss_l1_r = jnp.mean(jnp.abs(feat_fake - feat_real))
    warped_big_r = warp_ref(x_big, corr_big)
    loss_warp_big_r = jnp.mean(jnp.abs(warped_big_r - tgt_big))

    assert jnp.allclose(warped, warped_r, atol=1e-5, rtol=1e-5)
    assert jnp.allclose(loss_sem, loss_sem_r, atol=1e-5, rtol=1e-5)
    assert jnp.allclose(g_fake, g_fake_r, atol=1e-5, rtol=1e-5)
    assert jnp.allclose(g_real, g_real_r, atol=1e-5, rtol=1e-5)
    assert jnp.allclose(loss_style, loss_style_r, atol=1e-5, rtol=1e-5)
    assert jnp.allclose(loss_l1, loss_l1_r, atol=1e-5, rtol=1e-5)
    assert jnp.allclose(warped_big, warped_big_r, atol=1e-5, rtol=1e-5)
    assert jnp.allclose(loss_warp_big, loss_warp_big_r, atol=1e-5, rtol=1e-5)

    print("KERNEL_OK")
</pallas_src>

<mosaic_0001>
module attributes {stable_mosaic.version = 11 : i64} {
  func.func @_bmm_warp_kernel(%arg0: i32, %arg1: i32, %arg2: i32, %arg3: memref<1x4x16xf32, #tpu.memory_space<vmem>>, %arg4: memref<1x16x16xf32, #tpu.memory_space<vmem>>, %arg5: memref<1x4x16xf32, #tpu.memory_space<vmem>>, %arg6: memref<4x16xf32, #tpu.memory_space<vmem>>) attributes {dimension_semantics = [#tpu.dimension_semantics<parallel>, #tpu.dimension_semantics<parallel>, #tpu.dimension_semantics<arbitrary>], iteration_bounds = array<i64: 2, 1, 1>, scalar_prefetch = 0 : i64, scratch_operands = 1 : i64, tpu.core_type = #tpu.core_type<tc>, window_params = [{transform_indices = @transform_0, window_bounds = array<i64: 1, 4, 16>}, {transform_indices = @transform_1, window_bounds = array<i64: 1, 16, 16>}, {transform_indices = @transform_2, window_bounds = array<i64: 1, 4, 16>}]} {
    %c0_i32 = arith.constant 0 : i32
    %0 = arith.cmpi eq, %arg2, %c0_i32 : i32
    %1 = arith.extui %0 : i1 to i32
    %c0_i32_0 = arith.constant 0 : i32
    %2 = arith.cmpi ne, %1, %c0_i32_0 : i32
    scf.if %2 {
      %cst_12 = arith.constant 0.000000e+00 : f32
      %14 = vector.broadcast %cst_12 : f32 to vector<4x16xf32>
      %c0_13 = arith.constant 0 : index
      %c0_14 = arith.constant 0 : index
      %15 = vector.load %arg6[%c0_13, %c0_14] : memref<4x16xf32, #tpu.memory_space<vmem>>, vector<4x16xf32>
      tpu.vector_store %arg6[%c0_13, %c0_14], %14 {strides = array<i32>} : memref<4x16xf32, #tpu.memory_space<vmem>>, vector<4x16xf32>,
    } else {
    }
    %c0 = arith.constant 0 : index
    %c0_1 = arith.constant 0 : index
    %3 = vector.load %arg6[%c0, %c0_1] : memref<4x16xf32, #tpu.memory_space<vmem>>, vector<4x16xf32>
    %c0_2 = arith.constant 0 : index
    %c0_3 = arith.constant 0 : index
    %c0_4 = arith.constant 0 : index
    %4 = vector.load %arg3[%c0_2, %c0_3, %c0_4] : memref<1x4x16xf32, #tpu.memory_space<vmem>>, vector<1x4x16xf32>
    %5 = vector.shape_cast %4 : vector<1x4x16xf32> to vector<4x16xf32>
    %c0_5 = arith.constant 0 : index
    %c0_6 = arith.constant 0 : index
    %c0_7 = arith.constant 0 : index
    %6 = vector.load %arg4[%c0_5, %c0_6, %c0_7] : memref<1x16x16xf32, #tpu.memory_space<vmem>>, vector<1x16x16xf32>
    %7 = vector.shape_cast %6 : vector<1x16x16xf32> to vector<16x16xf32>
    %cst = arith.constant dense<0.000000e+00> : vector<4x16xf32>
    %8 = tpu.matmul %5, %7, %cst {dimension_numbers = #tpu.dot_dimension_numbers<[1], [0], [0], [1], [0, 0, 1, 1], [], []>} : vector<4x16xf32>, vector<16x16xf32>, vector<4x16xf32> -> vector<4x16xf32>
    %9 = arith.addf %3, %8 : vector<4x16xf32>
    %c0_8 = arith.constant 0 : index
    %c0_9 = arith.constant 0 : index
    %10 = vector.load %arg6[%c0_8, %c0_9] : memref<4x16xf32, #tpu.memory_space<vmem>>, vector<4x16xf32>
    tpu.vector_store %arg6[%c0_8, %c0_9], %9 {strides = array<i32>} : memref<4x16xf32, #tpu.memory_space<vmem>>, vector<4x16xf32>,
    %c0_i32_10 = arith.constant 0 : i32
    %11 = arith.cmpi eq, %arg2, %c0_i32_10 : i32
    %12 = arith.extui %11 : i1 to i32
    %c0_i32_11 = arith.constant 0 : i32
    %13 = arith.cmpi ne, %12, %c0_i32_11 : i32
    scf.if %13 {
      %c0_12 = arith.constant 0 : index
      %c0_13 = arith.constant 0 : index
      %14 = vector.load %arg6[%c0_12, %c0_13] : memref<4x16xf32, #tpu.memory_space<vmem>>, vector<4x16xf32>
      %c0_14 = arith.constant 0 : index
      %c0_15 = arith.constant 0 : index
      %c0_16 = arith.constant 0 : index
      %15 = vector.load %arg5[%c0_14, %c0_15, %c0_16] : memref<1x4x16xf32, #tpu.memory_space<vmem>>, vector<1x4x16xf32>
      %16 = vector.shape_cast %15 : vector<1x4x16xf32> to vector<4x16xf32>
      %17 = vector.shape_cast %14 : vector<4x16xf32> to vector<1x4x16xf32>
      tpu.vector_store %arg5[%c0_14, %c0_15, %c0_16], %17 {strides = array<i32>} : memref<1x4x16xf32, #tpu.memory_space<vmem>>, vector<1x4x16xf32>,
    } else {
    }
    return
  }
  func.func @transform_0(%arg0: i32, %arg1: i32, %arg2: i32) -> (i32, i32, i32) {
    %c0_i32 = arith.constant 0 : i32
    %c0_i32_0 = arith.constant 0 : i32
    return %arg0, %c0_i32, %arg2 : i32, i32, i32
  }
  func.func @transform_1(%arg0: i32, %arg1: i32, %arg2: i32) -> (i32, i32, i32) {
    %c0_i32 = arith.constant 0 : i32
    return %arg0, %arg2, %arg1 : i32, i32, i32
  }
  func.func @transform_2(%arg0: i32, %arg1: i32, %arg2: i32) -> (i32, i32, i32) {
    %c0_i32 = arith.constant 0 : i32
    %c0_i32_0 = arith.constant 0 : i32
    return %arg0, %c0_i32, %arg1 : i32, i32, i32
  }
}

</mosaic_0001>

<bundles_post_ra>
// kernel: tpu_custom_call.1
= control target key start
LH: loop header
LB: loop body
LE: loop exit
PB: predicated region body
PF: predicated region fallthrough
CT: control target
= control target key end

     0   :  { %7 = vsyncpa [#allocation4], 0  ;;  %s806_s0 = inlined_call_operand.hbm [shape: f32[2,4,16], index: 0, kind: input, shape index: {}]   ;;  %s807_s1 = inlined_call_operand.hbm [shape: f32[2,16,16], index: 1, kind: input, shape index: {}]   ;;  %s808_s2 = inlined_call_operand.hbm [shape: f32[2,4,16], index: 2, kind: output, shape index: {}]  }
   0x1   :  { %9 = vsyncpa [#allocation4 + $0x1], 0 }
   0x2   :  { %10 = vsyncpa [#allocation7], 0 }
   0x3   :  { %12 = vsyncpa [#allocation7 + $0x1], 0 }
   0x4   :  { %13 = vsyncpa [#allocation5], 0 }
   0x5   :  { %15 = vsyncpa [#allocation5 + $0x1], 0  ;;  %s659_s9 = smov 0   ;;  %s661_s10 = smov 0  }
   0x6   :  { %s663_s11 = smov 0   ;;  %s665_s12 = smov 0  }
   0x7   :  { %s667_s13 = smov 0   ;;  %s669_s14 = smov 0  }
   0x8 LB: > { %s404_s15 = sadd.s32 4294967295, %s639_s14   ;;  %s405_s16 = sadd.s32 4294967294, %s639_s14   ;;  %s639_s14 = sphi %s669_s14, %s21_s14   ;;  %s635_s13 = sphi %s667_s13, %s818_s13   ;;  %s631_s12 = sphi %s665_s12, %s817_s12   ;;  %s627_s11 = sphi %s663_s11, %s816_s11   ;;  %s623_s10 = sphi %s661_s10, %s815_s10   ;;  %s619_s9 = sphi %s659_s9, %s814_s9  }
   0x9   : > { %s40_s17 = sadd.s32 1, %s635_s13  ;;  %s49_s18 = sadd.s32 1, %s627_s11 }
   0xa   : > { %p42_p0 = scmp.ge.s32.totalorder %s40_s17, 2  ;;  %p56_p1 = scmp.ne.s32.totalorder %s627_s11, %s623_s10 }
   0xb   : > { %p57_p2 = scmp.eq.s32.totalorder %s639_s14, 0  ;;  %p62_p3 = scmp.ne.s32.totalorder %s623_s10, %s619_s9 }
   0xc   : > { %s820_s17 = smov (%p42_p0, %s40_s17), 0  ;;  %p63_p5 = scmp.eq.s32.totalorder %s404_s15, 0 }
   0xd   : > { %p700_p4 = por %p57_p2, %p56_p1  ;;  %s44_s20 = ssub.s32 %s635_s13, %s820_s17 }
   0xe   : > { %p118_p6 = scmp.eq.s32.totalorder %s404_s15, 1  ;;  %p47_p7 = scmp.eq.s32.totalorder %s44_s20, 0 }
   0xf   : > { %p706_p8 = por %p63_p5, %p62_p3  ;;  %p124_p10 = scmp.eq.s32.totalorder %s405_s16, 1 }
  0x10   : > { %p710_p9 = por %p118_p6, %p56_p1  ;;  %p407_p12 = scmp.ge.s32.totalorder %s639_s14, 2 }
  0x11   : > { %s715_s23 = scalar_select %p47_p7, %s627_s11, %s49_s18  }
  0x12   : > { %p717_p11 = por %p124_p10, %p62_p3  ;;  %p440_p13 = scmp.lt.s32.totalorder %s639_s14, 2 }
  0x13   : > { %s724_s25 = sand.u32 1, %s627_s11   ;;  %s409_s27 = sshll.u32 %s635_s13, 2 }
  0x14   : > { %s408_s26 = sshll.u32 %s724_s25, 2  ;;  %s153_s30 = scalar_lea.hbm %s806_s0, %s409_s27 }
  0x15   : > { %s148_s3 = scalar_lea.vmem [#allocation3], %s408_s26  ;;  %s155_s5 = sshll.u32 %s153_s30, 4  ;;  %s156_s5 = int_to_ptr.hbm [resolvable:$true] %s155_s5 }
  0x16   : > { %s157_s4 = sshll.u32 %s148_s3, 4  ;;  %p733_p0 = pnand %p440_p13, %p700_p4  ;;  %s158_s4 = int_to_ptr.vmem [resolvable:$true] %s157_s4 }
  0x17   : > { %p413_p1 = scmp.ge.s32.totalorder %s639_s14, 1  ;;  %p187_p2 = scmp.lt.s32.totalorder %s639_s14, 3 }
  0x18   : > { %s145_s7 = scalar_lea.sflag [#allocation4], %s724_s25  ;;  %s410_s8 = sshll.u32 %s724_s25, 4 }
  0x19   : > { %432 = dma.hbm_to_vmem [thread:$0]  (!%p733_p0), %s156_s5, 64, %s158_s4, %s145_s7  }
  0x1a   : > { %p188_p3 = pnand %p413_p1, %p187_p2  ;;  %s422_s15 = sshll.u32 %s635_s13, 4 }
  0x1b   : > { %s176_s20 = scalar_lea.hbm %s807_s1, %s422_s15  ;;  %s168_s26 = scalar_lea.vmem [#allocation6], %s410_s8 }
  0x1c   : > { %s179_s19 = sshll.u32 %s168_s26, 4  ;;  %s177_s27 = sshll.u32 %s176_s20, 4  ;;  %s180_s19 = int_to_ptr.vmem [resolvable:$true] %s179_s19  ;;  %s178_s27 = int_to_ptr.hbm [resolvable:$true] %s177_s27 }
  0x1d   : > { %s165_s28 = scalar_lea.sflag [#allocation7], %s724_s25  ;;  %s641_s29 = smov 128  }
  0x1e   : > { %s642_s30 = smov 8   ;;  %191 = sbr.rel (%p188_p3) target bundleno = 182 (0xb6), region = 28 }
  0x1f   : > { %435 = dma.hbm_to_vmem [thread:$0]  (!%p733_p0), %s178_s27, 256, %s180_s19, %s165_s28, %s641_s29, %s641_s29, %s642_s30  }
  0x20   : > { %s751_s3 = sand.u32 (!%p188_p3), 1, %s623_s10  }
  0x21   : > { %s414_s4 = sshll.u32 (!%p188_p3), %s751_s3, 2  ;;  %s194_s5 = scalar_lea.sflag (!%p188_p3), [#allocation4], %s751_s3 }
  0x22   : > { %s197_s7 = scalar_lea.vmem (!%p188_p3), [#allocation3], %s414_s4 }
  0x23   : > { %606 = dma.done.wait (%p706_p8), %s194_s5, 64  }
  0x24   : > { %608 = vsyncadd (%p706_p8), %s194_s5, 4294967232  ;;  %s415_s25 = sshll.u32 %s751_s3, 4  ;;  %s204_s6 = scalar_lea.sflag [#allocation7], %s751_s3 }
  0x25   : > { %s207_s8 = scalar_lea.vmem [#allocation6], %s415_s25 }
  0x26   : > { %610 = dma.done.wait (%p706_p8), %s204_s6, 256  }
  0x27   : > { %612 = vsyncadd (%p706_p8), %s204_s6, 4294967040  ;;  %vm239_vm0 = vcmask 125952   ;;  %v643_v0 = vmov 0.0   ;;  %v244_v1 = vld [vmem:[%s207_s8 + $0x8] sm:$0xff]  ;;  %v243_v2 = vld [vmem:[%s207_s8] sm:$0xff]  ;;  %vm245_vm1 = vcmask 130048  }
  0x28   : > { %240 = vst.msk [vmem:[#allocation2] sm:$0xf] %vm239_vm0, %v643_v0  ;;  %263 = vmatpush.msra.mxu0 %v244_v1  ;;  %v242_v3 = vld [vmem:[%s197_s7] sm:$0xf]  ;;  %s419_s15 = sshll.u32 %s631_s12, 2  ;;  %s233_s20 = scalar_lea.vmem [#allocation8], %s414_s4 }
  0x29   : > { %s289_s18 = scalar_lea.hbm %s808_s2, %s419_s15  ;;  %s291_s26 = sshll.u32 %s233_s20, 4  ;;  %s292_s26 = int_to_ptr.vmem [resolvable:$true] %s291_s26 }
  0x2a   : > { %264 = vmatpush.msra.mxu0 %v243_v2  ;;  %s293_s19 = sshll.u32 %s289_s18, 4  ;;  %s278_s27 = scalar_lea.sflag [#allocation5], %s751_s3  ;;  %s294_s19 = int_to_ptr.hbm [resolvable:$true] %s293_s19 }
  0x2b   : > { %417 = vmatmul.msk.f32.vlgmr.msra.gmra.mxu0 %vm245_vm1, %v242_v3  ;;  %s567_s28 = sshra.s32 %s294_s19, 4  ;;  %s573_s5 = scalar_lea.hbm %s808_s2, 8  ;;  %s568_s28 = int_to_ptr.hbm [resolvable:$true] %s567_s28 }
  0x2c   : > { %s569_s12 = scalar_lea.hbm %s568_s28, 4  ;;  %p574_p7 = scmp.lt.s32.totalorder %s568_s28, %s808_s2 }
  0x2d   : > { %p570_p4 = scmp.ne.s32.totalorder %s568_s28, %s569_s12  ;;  %p575_p8 = scmp.lt.s32.totalorder %s573_s5, %s569_s12 }
  0x2f   : > { %v241_v4 = vld [vmem:[#allocation2] sm:$0xf]  ;;  %p571_p5 = pnand %p570_p4, %p710_p9  ;;  %p576_p10 = por %p575_p8, %p574_p7 }
  0x31   : > { %p572_p6 = pneg %p571_p5 }
  0x33   : > { %p577_p13 = pnand %p576_p10, %p572_p6 }
  0xa8   : > { %v266_v5 = vpop.f32.mrf.mxu0 }
  0xa9   : > { %v269_v6 = vadd.f32 %v266_v5, %v241_v4 }
  0xab   : > { %271 = vst.msk [vmem:[#allocation2] sm:$0xf] %vm239_vm0, %v269_v6 }
  0xb2   : > { %v275_v7 = vld [vmem:[#allocation2] sm:$0xf] }
  0xb3   : > { %276 = vst.msk [vmem:[%s233_s20] sm:$0xf] %vm239_vm0, %v275_v7 }
  0xb4   : > { %580 = shalt.err (!%p577_p13)
}
  0xb5   : > { %427 = dma.vmem_to_hbm [thread:$0]  (%p710_p9), %s292_s26, 64, %s294_s19, %s278_s27  }
  0xb6 PF: > { %s305_s3 = sand.u32 1, %s619_s9   ;;  %p437_p0 = pnand %p407_p12, %p717_p11 }
  0xb7   : > { %s306_s25 = scalar_lea.sflag [#allocation5], %s305_s3 }
  0xb8   : > { %p438_p1 = pneg %p437_p0 }
  0xba   : > { %614 = dma.done.wait (%p438_p1), %s306_s25, 64  }
  0xbb   : > { %616 = vsyncadd (%p438_p1), %s306_s25, 4294967232  ;;  %s21_s14 = sadd.s32 1, %s639_s14   ;;  %s814_s9 = smov %s623_s10 }
  0xbc   : > { %p18_p2 = scmp.ge.s32.totalorder %s21_s14, 4   ;;  %s815_s10 = smov %s627_s11 }
  0xbd   : > { %s816_s11 = smov %s715_s23  ;;  %s817_s12 = smov %s635_s13 }
  0xbe   : > { %s818_s13 = smov %s820_s17  ;;  %20 = sbr.rel (!%p18_p2) target bundleno = 8 (0x8), region = 94 }
  0xc3   :  { %312 = vsyncpa [#allocation4], 1 }
  0xc4   :  { %314 = vsyncpa [#allocation4 + $0x1], 1 }
  0xc5   :  { %315 = vsyncpa [#allocation7], 1 }
  0xc6   :  { %317 = vsyncpa [#allocation7 + $0x1], 1 }
  0xc7   :  { %318 = vsyncpa [#allocation5], 1 }
  0xc8   :  { %320 = vsyncpa [#allocation5 + $0x1], 1 }

</bundles_post_ra>
